<compile_context>
chip_gen: v6e
topology: v6e:2x2x1
jax: 0.10.0
libtpu: 0.0.40
codegen_flags: <defaults>
</compile_context>

<pallas_src>
import math
import functools

import jax
import jax.numpy as jnp
from jax.experimental import pallas as pl
from jax.experimental.pallas import tpu as pltpu

EPS = 1e-06
_NEG_BIG = -1e30  # finite "minus infinity" (avoids -inf - -inf NaNs in online LSE)


def _round_up(v, m):
    return ((v + m - 1) // m) * m


def _cdiv(a, b):
    return -(-a // b)


def _pad_to(a, target, axis):
    pad = target - a.shape[axis]
    if pad == 0:
        return a
    widths = [(0, 0)] * a.ndim
    widths[axis] = (0, pad)
    return jnp.pad(a, widths)


def _mine_kernel(xT_ref, zT_ref, zmT_ref, w1xT_ref, w1zT_ref, b1_ref, w2T_ref,
                 psum_ref, pmax_ref, psexp_ref,
                 sum_acc, m_acc, s_acc, *, n, tn, tiles_per_shard, needs_mask):
    c = pl.program_id(0)            # batch shard (parallel; megacore on v7x)
    j = pl.program_id(1)            # sequential tile within the shard

    @pl.when(j == 0)
    def _init():
        sum_acc[...] = jnp.zeros_like(sum_acc)
        m_acc[...] = jnp.full_like(m_acc, _NEG_BIG)
        s_acc[...] = jnp.zeros_like(s_acc)

    # ---- layer 1, batch-on-lanes: (Hp, TN) hidden pre-activations ----------
    # hx (with b1 folded in) is computed once and shared by joint & marginal.
    hx = jnp.dot(w1xT_ref[...], xT_ref[...],
                 preferred_element_type=jnp.float32) + b1_ref[...]        # (Hp, TN)
    hzj = jnp.dot(w1zT_ref[...], zT_ref[...],
                  preferred_element_type=jnp.float32)                     # (Hp, TN)
    hzm = jnp.dot(w1zT_ref[...], zmT_ref[...],
                  preferred_element_type=jnp.float32)                     # (Hp, TN)
    h_joint = jnp.maximum(hx + hzj, 0.0)
    h_marg = jnp.maximum(hx + hzm, 0.0)

    # ---- layer 2 on the MXU: (8, Hp) @ (Hp, TN) -> lane-dense (1, TN) T ----
    # w2T rows 1..7 are zero padding; row 0 holds W2^T. b2 is added in the wrapper.
    w2t = w2T_ref[...]
    t_joint = jnp.dot(w2t, h_joint, preferred_element_type=jnp.float32)[0:1, :]
    t_marg = jnp.dot(w2t, h_marg, preferred_element_type=jnp.float32)[0:1, :]

    if needs_mask:  # static: only emitted when the padded grid exceeds n rows
        lane = jax.lax.broadcasted_iota(jnp.int32, (1, tn), 1)
        row = (c * tiles_per_shard + j) * tn + lane
        valid = row < n
        t_joint = jnp.where(valid, t_joint, 0.0)
        t_marg = jnp.where(valid, t_marg, _NEG_BIG)

    # ---- lane-dense per-lane accumulators (reduced once in the finalize) ---
    sum_acc[...] += t_joint
    m_prev = m_acc[...]
    m_new = jnp.maximum(m_prev, t_marg)
    s_acc[...] = s_acc[...] * jnp.exp(m_prev - m_new) + jnp.exp(t_marg - m_new)
    m_acc[...] = m_new

    @pl.when(j == pl.num_programs(1) - 1)
    def _finalize():
        ssum = jnp.sum(sum_acc[...], axis=(0, 1), keepdims=True)           # (1, 1)
        m_part = jnp.max(m_acc[...], axis=(0, 1), keepdims=True)           # (1, 1)
        # Lanes that never saw a valid row keep m=-1e30 -> exp(-huge)=0 here.
        s_part = jnp.sum(s_acc[...] * jnp.exp(m_acc[...] - m_part),
                         axis=(0, 1), keepdims=True)                       # (1, 1)
        psum_ref[...] = jnp.broadcast_to(ssum, (1, 1, 128))
        pmax_ref[...] = jnp.broadcast_to(m_part, (1, 1, 128))
        psexp_ref[...] = jnp.broadcast_to(s_part, (1, 1, 128))
    # TODO(synk): EMALoss custom backward (grad scaled by running_mean) is a
    # gradient-only construct and is not part of the forward pass implemented here.


def mine_forward(x, z, z_marg, params, *, lam=0.1, C=0.0, tile_n=2048,
                 num_shards=2, compute_dtype=jnp.bfloat16):
    """Forward value of Mine (loss='mine') plus t_exp for the running-mean update."""
    w1x, w1z, b1, w2, b2 = params
    n, dx = x.shape
    dz = z.shape[1]
    hid = w1x.shape[1]

    # Zero-padded sizes (numerically exact: padded features / hidden units
    # contribute relu(0)=0 through zero weights).
    hp = _round_up(hid, 128)
    dxp = _round_up(dx, 16)
    dzp = _round_up(dz, 16)

    # Lane-dense batch tile (multiple of 128). Per-step pipeline overhead is
    # amortized at 2048 rows; VMEM use at that tile is only a few MiB.
    tn = min(_round_up(max(int(tile_n), 128), 128), _round_up(n, 128))
    num_shards = max(1, min(int(num_shards), _cdiv(n, tn)))
    tiles_per_shard = _cdiv(_cdiv(n, tn), num_shards)
    n_pad = num_shards * tiles_per_shard * tn
    needs_mask = (n_pad != n)

    # Feature-major (batch-on-lanes) inputs.
    def prep_act(a, dp):
        a = a.astype(compute_dtype).T                 # (D, N)
        return _pad_to(_pad_to(a, dp, 0), n_pad, 1)   # (Dp, n_pad)

    xT = prep_act(x, dxp)
    zT = prep_act(z, dzp)
    zmT = prep_act(z_marg, dzp)

    w1xT = _pad_to(_pad_to(w1x.astype(compute_dtype).T, hp, 0), dxp, 1)    # (Hp, DXp)
    w1zT = _pad_to(_pad_to(w1z.astype(compute_dtype).T, hp, 0), dzp, 1)    # (Hp, DZp)
    b1c = _pad_to(b1.reshape(hid, 1).astype(jnp.float32), hp, 0)           # (Hp, 1)
    w2t = _pad_to(_pad_to(w2.reshape(1, hid).astype(jnp.float32), hp, 1), 8, 0)  # (8, Hp)
    b2s = jnp.asarray(b2, jnp.float32).reshape(())

    kernel = functools.partial(_mine_kernel, n=n, tn=tn,
                               tiles_per_shard=tiles_per_shard,
                               needs_mask=needs_mask)

    def act_spec(dp):
        return pl.BlockSpec((dp, tn), lambda c, j: (0, c * tiles_per_shard + j))

    def const_spec(a):
        return pl.BlockSpec(a.shape, lambda c, j: (0, 0))

    part_spec = pl.BlockSpec((1, 1, 128), lambda c, j: (c, 0, 0))
    part_shape = jax.ShapeDtypeStruct((num_shards, 1, 128), jnp.float32)

    psum, pmax, psexp = pl.pallas_call(
        kernel,
        grid_spec=pltpu.PrefetchScalarGridSpec(
            num_scalar_prefetch=0,
            grid=(num_shards, tiles_per_shard),
            in_specs=[
                act_spec(dxp), act_spec(dzp), act_spec(dzp),
                const_spec(w1xT), const_spec(w1zT), const_spec(b1c),
                const_spec(w2t),
            ],
            out_specs=(part_spec, part_spec, part_spec),
            scratch_shapes=[
                pltpu.VMEM((1, tn), jnp.float32),   # running per-lane sum of T(x, z)
                pltpu.VMEM((1, tn), jnp.float32),   # running per-lane max of T(x, z_marg)
                pltpu.VMEM((1, tn), jnp.float32),   # running per-lane sum(exp(. - max))
            ],
        ),
        out_shape=(part_shape, part_shape, part_shape),
        compiler_params=pltpu.CompilerParams(
            dimension_semantics=("parallel", "arbitrary"),   # shards parallel, tiles sequential
            vmem_limit_bytes=32 * 1024 * 1024),               # far above actual need (~few MiB)
    )(xT, zT, zmT, w1xT, w1zT, b1c, w2t)

    psum = psum[:, 0, 0]
    pmax = pmax[:, 0, 0]
    psexp = psexp[:, 0, 0]

    # Combine per-shard partials (b2 is a constant shift of every T value).
    score = jnp.sum(psum) / n + b2s                          # mean(T(x, z))
    m_glob = jnp.max(pmax)
    s_glob = jnp.sum(psexp * jnp.exp(pmax - m_glob))
    second = m_glob + jnp.log(s_glob) + b2s - math.log(n)    # log(mean(exp(T(x, z_marg))))
    loss = -score + second + lam * (second - C) ** 2
    t_exp = jnp.exp(second)                                  # for the EMA state
    return loss, t_exp


def ema(mu, alpha, past_ema):
    return alpha * mu + (1.0 - alpha) * past_ema


def init_params(key, dx, dz, hidden):
    k1, k2, k3 = jax.random.split(key, 3)
    w1x = 0.1 * jax.random.normal(k1, (dx, hidden), jnp.float32)
    w1z = 0.1 * jax.random.normal(k2, (dz, hidden), jnp.float32)
    b1 = jnp.zeros((1, hidden), jnp.float32)
    w2 = 0.1 * jax.random.normal(k3, (hidden, 1), jnp.float32)
    b2 = jnp.zeros((1, 1), jnp.float32)
    return (w1x, w1z, b1, w2, b2)


if __name__ == "__main__":
    # N not a multiple of the tile, DX != DZ, H not a multiple of 128:
    # exercises masking, feature/hidden padding, multi-tile online LSE and
    # the 2-shard partial combine (incl. a shard with a ragged tail).
    N, DX, DZ, H = 300, 12, 20, 48
    alpha, lam, C = 0.01, 0.1, 0.0

    key = jax.random.PRNGKey(0)
    kx, kz, kp, kperm = jax.random.split(key, 4)
    x = jax.random.normal(kx, (N, DX), jnp.float32)
    z = jax.random.normal(kz, (N, DZ), jnp.float32)
    params = init_params(kp, DX, DZ, H)

    # z_marg = z[randperm(N)]  (deterministic permutation)
    perm = jax.random.permutation(kperm, N)
    z_marg = z[perm]

    # tile_n=128, num_shards=2 -> grid (2, 2): two shards, two tiles each.
    loss, t_exp = mine_forward(x, z, z_marg, params, lam=lam, C=C,
                               tile_n=128, num_shards=2)
    loss = jax.block_until_ready(loss)
    t_exp = jax.block_until_ready(t_exp)

    # running_mean state update (forward-pass bookkeeping, as in ema_loss)
    running_mean = 0.0
    if running_mean == 0:
        running_mean = float(t_exp)
    else:
        running_mean = ema(float(t_exp), alpha, running_mean)

    w1x, w1z, b1, w2, b2 = params

    # Reference 1: same bf16-matmul / f32-accumulate path as the kernel (tight check).
    xb, zb, zmb = (a.astype(jnp.bfloat16) for a in (x, z, z_marg))
    w1xb, w1zb = w1x.astype(jnp.bfloat16), w1z.astype(jnp.bfloat16)

    def stats_bf16(zz):
        h = jnp.maximum(jnp.dot(xb, w1xb, preferred_element_type=jnp.float32)
                        + jnp.dot(zz, w1zb, preferred_element_type=jnp.float32) + b1, 0.0)
        return h @ w2 + b2

    score_ref = jnp.mean(stats_bf16(zb))
    t_marg_ref = stats_bf16(zmb)
    second_ref = jax.scipy.special.logsumexp(t_marg_ref) - math.log(N)
    loss_ref_bf16 = -score_ref + second_ref + lam * (second_ref - C) ** 2
    texp_ref = jnp.exp(second_ref)
    assert jnp.allclose(loss, loss_ref_bf16, atol=1e-3, rtol=1e-3), (loss, loss_ref_bf16)
    assert jnp.allclose(t_exp, texp_ref, atol=1e-3, rtol=1e-3), (t_exp, texp_ref)

    # Reference 2: full-f32 module semantics (loose check: bf16 input rounding only).
    def stats_f32(zz):
        h = jnp.maximum(x @ w1x + zz @ w1z + b1, 0.0)
        return h @ w2 + b2

    score_f32 = jnp.mean(stats_f32(z))
    second_f32 = jnp.log(jnp.mean(jnp.exp(stats_f32(z_marg))))
    loss_f32 = -score_f32 + second_f32 + lam * (second_f32 - C) ** 2
    assert jnp.allclose(loss, loss_f32, atol=5e-2, rtol=5e-2), (loss, loss_f32)

    print("KERNEL_OK")
</pallas_src>

<mosaic_0001>
module attributes {stable_mosaic.version = 11 : i64} {
  func.func @_mine_kernel(%arg0: i32, %arg1: i32, %arg2: memref<16x128xbf16, #tpu.memory_space<vmem>>, %arg3: memref<32x128xbf16, #tpu.memory_space<vmem>>, %arg4: memref<32x128xbf16, #tpu.memory_space<vmem>>, %arg5: memref<128x16xbf16, #tpu.memory_space<vmem>>, %arg6: memref<128x32xbf16, #tpu.memory_space<vmem>>, %arg7: memref<128x1xf32, #tpu.memory_space<vmem>>, %arg8: memref<8x128xf32, #tpu.memory_space<vmem>>, %arg9: memref<1x1x128xf32, #tpu.memory_space<vmem>>, %arg10: memref<1x1x128xf32, #tpu.memory_space<vmem>>, %arg11: memref<1x1x128xf32, #tpu.memory_space<vmem>>, %arg12: memref<1x128xf32, #tpu.memory_space<vmem>>, %arg13: memref<1x128xf32, #tpu.memory_space<vmem>>, %arg14: memref<1x128xf32, #tpu.memory_space<vmem>>) attributes {dimension_semantics = [#tpu.dimension_semantics<parallel>, #tpu.dimension_semantics<arbitrary>], iteration_bounds = array<i64: 2, 2>, scalar_prefetch = 0 : i64, scratch_operands = 3 : i64, tpu.core_type = #tpu.core_type<tc>, window_params = [{transform_indices = @transform_0, window_bounds = array<i64: 16, 128>}, {transform_indices = @transform_1, window_bounds = array<i64: 32, 128>}, {transform_indices = @transform_2, window_bounds = array<i64: 32, 128>}, {pipeline_mode = #tpu.pipeline_mode<synchronous>, transform_indices = @transform_3, window_bounds = array<i64: 128, 16>}, {pipeline_mode = #tpu.pipeline_mode<synchronous>, transform_indices = @transform_4, window_bounds = array<i64: 128, 32>}, {pipeline_mode = #tpu.pipeline_mode<synchronous>, transform_indices = @transform_5, window_bounds = array<i64: 128, 1>}, {pipeline_mode = #tpu.pipeline_mode<synchronous>, transform_indices = @transform_6, window_bounds = array<i64: 8, 128>}, {transform_indices = @transform_7, window_bounds = array<i64: 1, 1, 128>}, {transform_indices = @transform_8, window_bounds = array<i64: 1, 1, 128>}, {transform_indices = @transform_9, window_bounds = array<i64: 1, 1, 128>}]} {
    %c0_i32 = arith.constant 0 : i32
    %0 = arith.cmpi eq, %arg1, %c0_i32 : i32
    %1 = arith.extui %0 : i1 to i32
    %c0_i32_0 = arith.constant 0 : i32
    %2 = arith.cmpi ne, %1, %c0_i32_0 : i32
    scf.if %2 {
      %cst_37 = arith.constant 0.000000e+00 : f32
      %55 = vector.broadcast %cst_37 : f32 to vector<1x128xf32>
      %c0_38 = arith.constant 0 : index
      %c0_39 = arith.constant 0 : index
      %56 = vector.load %arg12[%c0_38, %c0_39] : memref<1x128xf32, #tpu.memory_space<vmem>>, vector<1x128xf32>
      tpu.vector_store %arg12[%c0_38, %c0_39], %55 {strides = array<i32>} : memref<1x128xf32, #tpu.memory_space<vmem>>, vector<1x128xf32>,
      %cst_40 = arith.constant -1.000000e+30 : f32
      %57 = vector.broadcast %cst_40 : f32 to vector<1x128xf32>
      %c0_41 = arith.constant 0 : index
      %c0_42 = arith.constant 0 : index
      %58 = vector.load %arg13[%c0_41, %c0_42] : memref<1x128xf32, #tpu.memory_space<vmem>>, vector<1x128xf32>
      tpu.vector_store %arg13[%c0_41, %c0_42], %57 {strides = array<i32>} : memref<1x128xf32, #tpu.memory_space<vmem>>, vector<1x128xf32>,
      %cst_43 = arith.constant 0.000000e+00 : f32
      %59 = vector.broadcast %cst_43 : f32 to vector<1x128xf32>
      %c0_44 = arith.constant 0 : index
      %c0_45 = arith.constant 0 : index
      %60 = vector.load %arg14[%c0_44, %c0_45] : memref<1x128xf32, #tpu.memory_space<vmem>>, vector<1x128xf32>
      tpu.vector_store %arg14[%c0_44, %c0_45], %59 {strides = array<i32>} : memref<1x128xf32, #tpu.memory_space<vmem>>, vector<1x128xf32>,
    } else {
    }
    %c0 = arith.constant 0 : index
    %c0_1 = arith.constant 0 : index
    %3 = vector.load %arg5[%c0, %c0_1] : memref<128x16xbf16, #tpu.memory_space<vmem>>, vector<128x16xbf16>
    %c0_2 = arith.constant 0 : index
    %c0_3 = arith.constant 0 : index
    %4 = vector.load %arg2[%c0_2, %c0_3] : memref<16x128xbf16, #tpu.memory_space<vmem>>, vector<16x128xbf16>
    %cst = arith.constant dense<0.000000e+00> : vector<128x128xf32>
    %5 = tpu.matmul %3, %4, %cst {dimension_numbers = #tpu.dot_dimension_numbers<[1], [0], [0], [1], [0, 0, 1, 1], [], []>} : vector<128x16xbf16>, vector<16x128xbf16>, vector<128x128xf32> -> vector<128x128xf32>
    %c0_4 = arith.constant 0 : index
    %c0_5 = arith.constant 0 : index
    %6 = vector.load %arg7[%c0_4, %c0_5] : memref<128x1xf32, #tpu.memory_space<vmem>>, vector<128x1xf32>
    %7 = vector.broadcast %6 : vector<128x1xf32> to vector<128x128xf32>
    %8 = arith.addf %5, %7 : vector<128x128xf32>
    %c0_6 = arith.constant 0 : index
    %c0_7 = arith.constant 0 : index
    %9 = vector.load %arg6[%c0_6, %c0_7] : memref<128x32xbf16, #tpu.memory_space<vmem>>, vector<128x32xbf16>
    %c0_8 = arith.constant 0 : index
    %c0_9 = arith.constant 0 : index
    %10 = vector.load %arg3[%c0_8, %c0_9] : memref<32x128xbf16, #tpu.memory_space<vmem>>, vector<32x128xbf16>
    %cst_10 = arith.constant dense<0.000000e+00> : vector<128x128xf32>
    %11 = tpu.matmul %9, %10, %cst_10 {dimension_numbers = #tpu.dot_dimension_numbers<[1], [0], [0], [1], [0, 0, 1, 1], [], []>} : vector<128x32xbf16>, vector<32x128xbf16>, vector<128x128xf32> -> vector<128x128xf32>
    %c0_11 = arith.constant 0 : index
    %c0_12 = arith.constant 0 : index
    %12 = vector.load %arg6[%c0_11, %c0_12] : memref<128x32xbf16, #tpu.memory_space<vmem>>, vector<128x32xbf16>
    %c0_13 = arith.constant 0 : index
    %c0_14 = arith.constant 0 : index
    %13 = vector.load %arg4[%c0_13, %c0_14] : memref<32x128xbf16, #tpu.memory_space<vmem>>, vector<32x128xbf16>
    %cst_15 = arith.constant dense<0.000000e+00> : vector<128x128xf32>
    %14 = tpu.matmul %12, %13, %cst_15 {dimension_numbers = #tpu.dot_dimension_numbers<[1], [0], [0], [1], [0, 0, 1, 1], [], []>} : vector<128x32xbf16>, vector<32x128xbf16>, vector<128x128xf32> -> vector<128x128xf32>
    %15 = arith.addf %8, %11 : vector<128x128xf32>
    %cst_16 = arith.constant 0.000000e+00 : f32
    %16 = vector.broadcast %cst_16 : f32 to vector<128x128xf32>
    %17 = arith.maximumf %15, %16 : vector<128x128xf32>
    %18 = arith.addf %8, %14 : vector<128x128xf32>
    %cst_17 = arith.constant 0.000000e+00 : f32
    %19 = vector.broadcast %cst_17 : f32 to vector<128x128xf32>
    %20 = arith.maximumf %18, %19 : vector<128x128xf32>
    %c0_18 = arith.constant 0 : index
    %c0_19 = arith.constant 0 : index
    %21 = vector.load %arg8[%c0_18, %c0_19] : memref<8x128xf32, #tpu.memory_space<vmem>>, vector<8x128xf32>
    %cst_20 = arith.constant dense<0.000000e+00> : vector<8x128xf32>
    %22 = tpu.matmul %21, %17, %cst_20 {dimension_numbers = #tpu.dot_dimension_numbers<[1], [0], [0], [1], [0, 0, 1, 1], [], []>} : vector<8x128xf32>, vector<128x128xf32>, vector<8x128xf32> -> vector<8x128xf32>
    %23 = vector.extract_strided_slice %22 {offsets = [0, 0], sizes = [1, 128], strides = [1, 1]} : vector<8x128xf32> to vector<1x128xf32>
    %cst_21 = arith.constant dense<0.000000e+00> : vector<8x128xf32>
    %24 = tpu.matmul %21, %20, %cst_21 {dimension_numbers = #tpu.dot_dimension_numbers<[1], [0], [0], [1], [0, 0, 1, 1], [], []>} : vector<8x128xf32>, vector<128x128xf32>, vector<8x128xf32> -> vector<8x128xf32>
    %25 = vector.extract_strided_slice %24 {offsets = [0, 0], sizes = [1, 128], strides = [1, 1]} : vector<8x128xf32> to vector<1x128xf32>
    %26 = tpu.iota {dimensions = array<i32: 1>} : vector<1x128xi32>
    %c2_i32 = arith.constant 2 : i32
    %27 = arith.muli %arg0, %c2_i32 : i32
    %28 = arith.addi %27, %arg1 : i32
    %c128_i32 = arith.constant 128 : i32
    %29 = arith.muli %28, %c128_i32 : i32
    %30 = vector.broadcast %29 : i32 to vector<1x128xi32>
    %31 = arith.addi %30, %26 : vector<1x128xi32>
    %c300_i32 = arith.constant 300 : i32
    %32 = vector.broadcast %c300_i32 : i32 to vector<1x128xi32>
    %33 = arith.cmpi slt, %31, %32 : vector<1x128xi32>
    %cst_22 = arith.constant 0.000000e+00 : f32
    %34 = vector.broadcast %cst_22 : f32 to vector<1x128xf32>
    %35 = arith.select %33, %23, %34 : vector<1x128xi1>, vector<1x128xf32>
    %cst_23 = arith.constant -1.000000e+30 : f32
    %36 = vector.broadcast %cst_23 : f32 to vector<1x128xf32>
    %37 = arith.select %33, %25, %36 : vector<1x128xi1>, vector<1x128xf32>
    %c0_24 = arith.constant 0 : index
    %c0_25 = arith.constant 0 : index
    %38 = vector.load %arg12[%c0_24, %c0_25] : memref<1x128xf32, #tpu.memory_space<vmem>>, vector<1x128xf32>
    %39 = arith.addf %38, %35 : vector<1x128xf32>
    %c0_26 = arith.constant 0 : index
    %c0_27 = arith.constant 0 : index
    %40 = vector.load %arg12[%c0_26, %c0_27] : memref<1x128xf32, #tpu.memory_space<vmem>>, vector<1x128xf32>
    tpu.vector_store %arg12[%c0_26, %c0_27], %39 {strides = array<i32>} : memref<1x128xf32, #tpu.memory_space<vmem>>, vector<1x128xf32>,
    %c0_28 = arith.constant 0 : index
    %c0_29 = arith.constant 0 : index
    %41 = vector.load %arg13[%c0_28, %c0_29] : memref<1x128xf32, #tpu.memory_space<vmem>>, vector<1x128xf32>
    %42 = arith.maximumf %41, %37 : vector<1x128xf32>
    %c0_30 = arith.constant 0 : index
    %c0_31 = arith.constant 0 : index
    %43 = vector.load %arg14[%c0_30, %c0_31] : memref<1x128xf32, #tpu.memory_space<vmem>>, vector<1x128xf32>
    %44 = arith.subf %41, %42 : vector<1x128xf32>
    %45 = math.exp %44 : vector<1x128xf32>
    %46 = arith.mulf %43, %45 : vector<1x128xf32>
    %47 = arith.subf %37, %42 : vector<1x128xf32>
    %48 = math.exp %47 : vector<1x128xf32>
    %49 = arith.addf %46, %48 : vector<1x128xf32>
    %c0_32 = arith.constant 0 : index
    %c0_33 = arith.constant 0 : index
    %50 = vector.load %arg14[%c0_32, %c0_33] : memref<1x128xf32, #tpu.memory_space<vmem>>, vector<1x128xf32>
    tpu.vector_store %arg14[%c0_32, %c0_33], %49 {strides = array<i32>} : memref<1x128xf32, #tpu.memory_space<vmem>>, vector<1x128xf32>,
    %c0_34 = arith.constant 0 : index
    %c0_35 = arith.constant 0 : index
    %51 = vector.load %arg13[%c0_34, %c0_35] : memref<1x128xf32, #tpu.memory_space<vmem>>, vector<1x128xf32>
    tpu.vector_store %arg13[%c0_34, %c0_35], %42 {strides = array<i32>} : memref<1x128xf32, #tpu.memory_space<vmem>>, vector<1x128xf32>,
    %c1_i32 = arith.constant 1 : i32
    %52 = arith.cmpi eq, %arg1, %c1_i32 : i32
    %53 = arith.extui %52 : i1 to i32
    %c0_i32_36 = arith.constant 0 : i32
    %54 = arith.cmpi ne, %53, %c0_i32_36 : i32
    scf.if %54 {
      %c0_37 = arith.constant 0 : index
      %c0_38 = arith.constant 0 : index
      %55 = vector.load %arg12[%c0_37, %c0_38] : memref<1x128xf32, #tpu.memory_space<vmem>>, vector<1x128xf32>
      %56 = vector.shape_cast %55 : vector<1x128xf32> to vector<1x1x128xf32>
      %cst_39 = arith.constant dense<0.000000e+00> : vector<1xf32>
      %57 = vector.multi_reduction <add>, %56, %cst_39 [1, 2] : vector<1x1x128xf32> to vector<1xf32>
      %58 = vector.shape_cast %57 : vector<1xf32> to vector<1x1x1xf32>
      %59 = vector.extract %58[0, 0, 0] : f32 from vector<1x1x1xf32>
      %60 = vector.broadcast %59 : f32 to vector<1x1xf32>
      %c0_40 = arith.constant 0 : index
      %c0_41 = arith.constant 0 : index
      %61 = vector.load %arg13[%c0_40, %c0_41] : memref<1x128xf32, #tpu.memory_space<vmem>>, vector<1x128xf32>
      %62 = vector.shape_cast %61 : vector<1x128xf32> to vector<1x1x128xf32>
      %cst_42 = arith.constant dense<0xFF800000> : vector<1xf32>
      %63 = vector.multi_reduction <maximumf>, %62, %cst_42 [1, 2] : vector<1x1x128xf32> to vector<1xf32>
      %64 = vector.shape_cast %63 : vector<1xf32> to vector<1x1x1xf32>
      %65 = vector.extract %64[0, 0, 0] : f32 from vector<1x1x1xf32>
      %66 = vector.broadcast %65 : f32 to vector<1x1xf32>
      %c0_43 = arith.constant 0 : index
      %c0_44 = arith.constant 0 : index
      %67 = vector.load %arg14[%c0_43, %c0_44] : memref<1x128xf32, #tpu.memory_space<vmem>>, vector<1x128xf32>
      %c0_45 = arith.constant 0 : index
      %c0_46 = arith.constant 0 : index
      %68 = vector.load %arg13[%c0_45, %c0_46] : memref<1x128xf32, #tpu.memory_space<vmem>>, vector<1x128xf32>
      %69 = vector.broadcast %66 : vector<1x1xf32> to vector<1x128xf32>
      %70 = arith.subf %68, %69 : vector<1x128xf32>
      %71 = math.exp %70 : vector<1x128xf32>
      %72 = arith.mulf %67, %71 : vector<1x128xf32>
      %73 = vector.shape_cast %72 : vector<1x128xf32> to vector<1x1x128xf32>
      %cst_47 = arith.constant dense<0.000000e+00> : vector<1xf32>
      %74 = vector.multi_reduction <add>, %73, %cst_47 [1, 2] : vector<1x1x128xf32> to vector<1xf32>
      %75 = vector.shape_cast %74 : vector<1xf32> to vector<1x1x1xf32>
      %76 = vector.extract %75[0, 0, 0] : f32 from vector<1x1x1xf32>
      %77 = vector.broadcast %76 : f32 to vector<1x1xf32>
      %78 = vector.shape_cast %60 : vector<1x1xf32> to vector<1x1x1xf32>
      %79 = vector.broadcast %78 : vector<1x1x1xf32> to vector<1x1x128xf32>
      %c0_48 = arith.constant 0 : index
      %c0_49 = arith.constant 0 : index
      %c0_50 = arith.constant 0 : index
      %80 = vector.load %arg9[%c0_48, %c0_49, %c0_50] : memref<1x1x128xf32, #tpu.memory_space<vmem>>, vector<1x1x128xf32>
      tpu.vector_store %arg9[%c0_48, %c0_49, %c0_50], %79 {strides = array<i32>} : memref<1x1x128xf32, #tpu.memory_space<vmem>>, vector<1x1x128xf32>,
      %81 = vector.shape_cast %66 : vector<1x1xf32> to vector<1x1x1xf32>
      %82 = vector.broadcast %81 : vector<1x1x1xf32> to vector<1x1x128xf32>
      %c0_51 = arith.constant 0 : index
      %c0_52 = arith.constant 0 : index
      %c0_53 = arith.constant 0 : index
      %83 = vector.load %arg10[%c0_51, %c0_52, %c0_53] : memref<1x1x128xf32, #tpu.memory_space<vmem>>, vector<1x1x128xf32>
      tpu.vector_store %arg10[%c0_51, %c0_52, %c0_53], %82 {strides = array<i32>} : memref<1x1x128xf32, #tpu.memory_space<vmem>>, vector<1x1x128xf32>,
      %84 = vector.shape_cast %77 : vector<1x1xf32> to vector<1x1x1xf32>
      %85 = vector.broadcast %84 : vector<1x1x1xf32> to vector<1x1x128xf32>
      %c0_54 = arith.constant 0 : index
      %c0_55 = arith.constant 0 : index
      %c0_56 = arith.constant 0 : index
      %86 = vector.load %arg11[%c0_54, %c0_55, %c0_56] : memref<1x1x128xf32, #tpu.memory_space<vmem>>, vector<1x1x128xf32>
      tpu.vector_store %arg11[%c0_54, %c0_55, %c0_56], %85 {strides = array<i32>} : memref<1x1x128xf32, #tpu.memory_space<vmem>>, vector<1x1x128xf32>,
    } else {
    }
    return
  }
  func.func @transform_0(%arg0: i32, %arg1: i32) -> (i32, i32) {
    %c2_i32 = arith.constant 2 : i32
    %0 = arith.muli %arg0, %c2_i32 : i32
    %1 = arith.addi %0, %arg1 : i32
    %c0_i32 = arith.constant 0 : i32
    %c0_i32_0 = arith.constant 0 : i32
    return %c0_i32, %1 : i32, i32
  }
  func.func @transform_1(%arg0: i32, %arg1: i32) -> (i32, i32) {
    %c2_i32 = arith.constant 2 : i32
    %0 = arith.muli %arg0, %c2_i32 : i32
    %1 = arith.addi %0, %arg1 : i32
    %c0_i32 = arith.constant 0 : i32
    %c0_i32_0 = arith.constant 0 : i32
    return %c0_i32, %1 : i32, i32
  }
  func.func @transform_2(%arg0: i32, %arg1: i32) -> (i32, i32) {
    %c2_i32 = arith.constant 2 : i32
    %0 = arith.muli %arg0, %c2_i32 : i32
    %1 = arith.addi %0, %arg1 : i32
    %c0_i32 = arith.constant 0 : i32
    %c0_i32_0 = arith.constant 0 : i32
    return %c0_i32, %1 : i32, i32
  }
  func.func @transform_3(%arg0: i32, %arg1: i32) -> (i32, i32) {
    %c0_i32 = arith.constant 0 : i32
    %c0_i32_0 = arith.constant 0 : i32
    %c0_i32_1 = arith.constant 0 : i32
    return %c0_i32, %c0_i32_0 : i32, i32
  }
  func.func @transform_4(%arg0: i32, %arg1: i32) -> (i32, i32) {
    %c0_i32 = arith.constant 0 : i32
    %c0_i32_0 = arith.constant 0 : i32
    %c0_i32_1 = arith.constant 0 : i32
    return %c0_i32, %c0_i32_0 : i32, i32
  }
  func.func @transform_5(%arg0: i32, %arg1: i32) -> (i32, i32) {
    %c0_i32 = arith.constant 0 : i32
    %c0_i32_0 = arith.constant 0 : i32
    %c0_i32_1 = arith.constant 0 : i32
    return %c0_i32, %c0_i32_0 : i32, i32
  }
  func.func @transform_6(%arg0: i32, %arg1: i32) -> (i32, i32) {
    %c0_i32 = arith.constant 0 : i32
    %c0_i32_0 = arith.constant 0 : i32
    %c0_i32_1 = arith.constant 0 : i32
    return %c0_i32, %c0_i32_0 : i32, i32
  }
  func.func @transform_7(%arg0: i32, %arg1: i32) -> (i32, i32, i32) {
    %c0_i32 = arith.constant 0 : i32
    %c0_i32_0 = arith.constant 0 : i32
    %c0_i32_1 = arith.constant 0 : i32
    return %arg0, %c0_i32, %c0_i32_0 : i32, i32, i32
  }
  func.func @transform_8(%arg0: i32, %arg1: i32) -> (i32, i32, i32) {
    %c0_i32 = arith.constant 0 : i32
    %c0_i32_0 = arith.constant 0 : i32
    %c0_i32_1 = arith.constant 0 : i32
    return %arg0, %c0_i32, %c0_i32_0 : i32, i32, i32
  }
  func.func @transform_9(%arg0: i32, %arg1: i32) -> (i32, i32, i32) {
    %c0_i32 = arith.constant 0 : i32
    %c0_i32_0 = arith.constant 0 : i32
    %c0_i32_1 = arith.constant 0 : i32
    return %arg0, %c0_i32, %c0_i32_0 : i32, i32, i32
  }
}

</mosaic_0001>

<bundles_post_ra>
// kernel: tpu_custom_call.1
= control target key start
LH: loop header
LB: loop body
LE: loop exit
PB: predicated region body
PF: predicated region fallthrough
CT: control target
= control target key end

     0   :  { %s2823_s0 = inlined_call_operand.vmem [shape: bf16[16,512], index: 0, kind: input, shape index: {}]   ;;  %s2824_s1 = inlined_call_operand.vmem [shape: bf16[32,512], index: 1, kind: input, shape index: {}]   ;;  %s2825_s2 = inlined_call_operand.vmem [shape: bf16[32,512], index: 2, kind: input, shape index: {}]   ;;  %s2826_s3 = inlined_call_operand.vmem [shape: bf16[128,16], index: 3, kind: input, shape index: {}]   ;;  %s2827_s4 = inlined_call_operand.vmem [shape: bf16[128,32], index: 4, kind: input, shape index: {}]   ;;  %s2828_s5 = inlined_call_operand.vmem [shape: f32[128,1], index: 5, kind: input, shape index: {}]   ;;  %s2829_s6 = inlined_call_operand.vmem [shape: f32[8,128], index: 6, kind: input, shape index: {}]   ;;  %s2830_s7 = inlined_call_operand.hbm [shape: f32[2,1,128], index: 7, kind: output, shape index: {0}]   ;;  %s2831_s8 = inlined_call_operand.hbm [shape: f32[2,1,128], index: 8, kind: output, shape index: {1}]   ;;  %s2832_s9 = inlined_call_operand.hbm [shape: f32[2,1,128], index: 9, kind: output, shape index: {2}]  }
   0x1   :  { %2845 = sst [smem:[#allocation27_spill]] %s2823_s0 }
   0x2   :  { %2846 = sst [smem:[#allocation28_spill]] %s2824_s1 }
   0x3   :  { %2847 = sst [smem:[#allocation29_spill]] %s2825_s2 }
   0x4   :  { %2848 = sst [smem:[#allocation30_spill]] %s2826_s3 }
   0x5   :  { %2849 = sst [smem:[#allocation31_spill]] %s2829_s6 }
   0x6   :  { %2850 = sst [smem:[#allocation32_spill]] %s2830_s7 }
   0x7   :  { %2851 = sst [smem:[#allocation33_spill]] %s2831_s8 }
   0x8   :  { %2852 = sst [smem:[#allocation34_spill]] %s2832_s9 }
   0x9   :  { %15 = vsyncpa [#allocation9], 0 }
   0xa   :  { %17 = vsyncpa [#allocation9 + $0x1], 0 }
   0xb   :  { %18 = vsyncpa [#allocation11], 0 }
   0xc   :  { %20 = vsyncpa [#allocation11 + $0x1], 0  ;;  %s2300_s30 = smov 0   ;;  %s2302_s10 = smov 0  }
   0xd   :  { %s2304_s11 = smov 0   ;;  %s2306_s12 = smov 0  }
   0xe   :  { %s2308_s13 = smov 0   ;;  %s2310_s14 = smov 0  }
   0xf   :  { %s2312_s15 = smov 0   ;;  %s2314_s16 = smov 0  }
  0x10   :  { %s2316_s17 = smov 0   ;;  %s2318_s18 = smov 0  }
  0x11 LB: > { %2853 = sst [smem:[#allocation15_spill]] %s2232_s16  ;;  %s2837_s19 = sadd.s32 4294967295, %s2240_s18   ;;  %s2240_s18 = sphi %s2318_s18, %s26_s18   ;;  %s2236_s17 = sphi %s2316_s17, %s2895_s17   ;;  %s2232_s16 = sphi %s2314_s16, %s2894_s16   ;;  %s2228_s15 = sphi %s2312_s15, %s2893_s15   ;;  %s2224_s14 = sphi %s2310_s14, %s2892_s14   ;;  %s2220_s13 = sphi %s2308_s13, %s2900_s13   ;;  %s2216_s12 = sphi %s2306_s12, %s2899_s12   ;;  %s2212_s11 = sphi %s2304_s11, %s2898_s11   ;;  %s2208_s10 = sphi %s2302_s10, %s2897_s10   ;;  %s2204_s30 = sphi %s2300_s30, %s2896_s30  }
  0x12   : > { %2854 = sst [smem:[#allocation16_spill]] %s2236_s17  ;;  %s35_s21 = sadd.s32 1, %s2232_s16 }
  0x13   : > { %s38_s22 = sadd.s32 1, %s2236_s17  ;;  %p36_p0 = scmp.ge.s32.totalorder %s35_s21, 2 }
  0x14   : > { %s1671_s23 = sshll.u32 %s2236_s17, 1  ;;  %s49_s25 = sadd.s32 1, %s2220_s13 }
  0x15   : > { %s2356_s24 = sadd.s32 %s2232_s16, %s1671_s23  ;;  %s2902_s21 = smov (%p36_p0, %s35_s21), 0 }
  0x16   : > { %2855 = sst [smem:[#allocation17_spill]] %s2902_s21  ;;  %s2904_s22 = smov (!%p36_p0, %s38_s22), %s2236_s17 }
  0x17   : > { %p56_p1 = scmp.ne.s32.totalorder %s2220_s13, %s2216_s12  ;;  %p57_p2 = scmp.eq.s32.totalorder %s2240_s18, 0 }
  0x18   : > { %p40_p3 = scmp.ge.s32.totalorder %s2904_s22, 2  ;;  %s219_s26 = sadd.s32 1, %s2212_s11 }
  0x19   : > { %p2366_p4 = por %p57_p2, %p56_p1  ;;  %p229_p5 = scmp.ne.s32.totalorder %s2212_s11, %s2208_s10 }
  0x1a   : > { %s2906_s22 = smov (%p40_p3, %s2904_s22), 0  ;;  %p230_p6 = scmp.eq.s32.totalorder %s2837_s19, 3 }
  0x1b   : > { %2857 = sst [smem:[#allocation18_spill]] %s2906_s22  ;;  %p235_p7 = scmp.ne.s32.totalorder %s2208_s10, %s2204_s30 }
  0x1c   : > { %s1672_s28 = sshll.u32 %s2906_s22, 1  ;;  %s216_s29 = ssub.s32 %s2236_s17, %s2906_s22 }
  0x1d   : > { %s45_s23 = sadd.s32 %s1672_s28, %s2902_s21  ;;  %p217_p8 = scmp.eq.s32.totalorder %s216_s29, 0 }
  0x1e   : > { %s46_s20 = ssub.s32 %s2356_s24, %s45_s23  ;;  %p2383_p9 = por %p230_p6, %p229_p5 }
  0x1f   : > { %p47_p10 = scmp.eq.s32.totalorder %s46_s20, 0  ;;  %s2859_s9 = sadd.s32 4294967294, %s2240_s18  }
  0x20   : > { %p236_p11 = scmp.eq.s32.totalorder %s2859_s9, 3  ;;  %p1678_p13 = scmp.ge.s32.totalorder %s2240_s18, 4 }
  0x21   : > { %s2390_s7 = scalar_select %p217_p8, %s2212_s11, %s219_s26  }
  0x22   : > { %s2393_s8 = scalar_select %p47_p10, %s2220_s13, %s49_s25  }
  0x23   : > { %p2395_p12 = por %p236_p11, %p235_p7  ;;  %316 = sbr.rel (%p1678_p13) target bundleno = 77 (0x4d), region = 32 }
  0x24   : > { %2860 = sst [smem:[#allocation19_spill]] %s2393_s8 }
  0x28   : > { %319 = sbr.rel (!%p2366_p4) target bundleno = 51 (0x33), region = 36  ;;  %s321_s28 = sand.u32 (%p2366_p4), 1, %s2220_s13  }
  0x29   : > { %s1681_s20 = sshll.u32 (%p2366_p4), %s2356_s24, 2  ;;  %s1679_s29 = sshll.u32 (%p2366_p4), %s321_s28, 3 }
  0x2a   : > { %s2862_s0 = sld [smem:[#allocation27_spill]] (%p2366_p4)  ;;  %s323_s23 = scalar_lea.vmem (%p2366_p4), [#allocation5], %s1679_s29 }
  0x30   : > { %s327_s25 = scalar_lea.vmem %s2862_s0, %s1681_s20 }
  0x31   : > { %v344_v0 = vld [vmem:[%s327_s25] sm:$0xf]  ;;  %v346_v1 = vld [vmem:[%s327_s25 + $0x10] sm:$0xf] }
  0x32   : > { %345 = vst [vmem:[%s323_s23] sm:$0xf] %v344_v0  ;;  %347 = vst [vmem:[%s323_s23 + $0x4] sm:$0xf] %v346_v1 }
  0x33 PF: > { %375 = sbr.rel (!%p2366_p4) target bundleno = 64 (0x40), region = 77  ;;  %s377_s19 = sand.u32 (%p2366_p4), 1, %s2220_s13  }
  0x34   : > { %s1684_s22 = sshll.u32 (%p2366_p4), %s2356_s24, 2  ;;  %s1682_s21 = sshll.u32 (%p2366_p4), %s377_s19, 4 }
  0x35   : > { %s2863_s1 = sld [smem:[#allocation28_spill]] (%p2366_p4)  ;;  %s379_s20 = scalar_lea.vmem (%p2366_p4), [#allocation6], %s1682_s21 }
  0x3b   : > { %s383_s8 = scalar_lea.vmem %s2863_s1, %s1684_s22 }
  0x3c   : > { %v400_v2 = vld [vmem:[%s383_s8] sm:$0xf]  ;;  %v402_v3 = vld [vmem:[%s383_s8 + $0x10] sm:$0xf] }
  0x3d   : > { %401 = vst [vmem:[%s379_s20] sm:$0xf] %v400_v2  ;;  %403 = vst [vmem:[%s379_s20 + $0x4] sm:$0xf] %v402_v3  ;;  %v404_v4 = vld [vmem:[%s383_s8 + $0x20] sm:$0xf] }
  0x3e   : > { %v406_v5 = vld [vmem:[%s383_s8 + $0x30] sm:$0xf]  ;;  %405 = vst [vmem:[%s379_s20 + $0x8] sm:$0xf] %v404_v4 }
  0x3f   : > { %407 = vst [vmem:[%s379_s20 + $0xc] sm:$0xf] %v406_v5 }
  0x40 PF: > { %439 = sbr.rel (!%p2366_p4) target bundleno = 77 (0x4d), region = 118  ;;  %s441_s19 = sand.u32 (%p2366_p4), 1, %s2220_s13  }
  0x41   : > { %s1687_s29 = sshll.u32 (%p2366_p4), %s2356_s24, 2  ;;  %s1685_s9 = sshll.u32 (%p2366_p4), %s441_s19, 4 }
  0x42   : > { %s2864_s2 = sld [smem:[#allocation29_spill]] (%p2366_p4)  ;;  %s443_s21 = scalar_lea.vmem (%p2366_p4), [#allocation7], %s1685_s9 }
  0x48   : > { %s447_s26 = scalar_lea.vmem %s2864_s2, %s1687_s29 }
  0x49   : > { %v464_v6 = vld [vmem:[%s447_s26] sm:$0xf]  ;;  %v466_v7 = vld [vmem:[%s447_s26 + $0x10] sm:$0xf] }
  0x4a   : > { %465 = vst [vmem:[%s443_s21] sm:$0xf] %v464_v6  ;;  %467 = vst [vmem:[%s443_s21 + $0x4] sm:$0xf] %v466_v7  ;;  %v468_v8 = vld [vmem:[%s447_s26 + $0x20] sm:$0xf] }
  0x4b   : > { %v470_v9 = vld [vmem:[%s447_s26 + $0x30] sm:$0xf]  ;;  %469 = vst [vmem:[%s443_s21 + $0x8] sm:$0xf] %v468_v8 }
  0x4c   : > { %471 = vst [vmem:[%s443_s21 + $0xc] sm:$0xf] %v470_v9 }
  0x4d PF: > { %p1688_p0 = scmp.ge.s32.totalorder %s2240_s18, 1  ;;  %p502_p1 = scmp.lt.s32.totalorder %s2240_s18, 5 }
  0x4f   : > { %p503_p2 = pnand %p1688_p0, %p502_p1 }
  0x51   : > { %506 = sbr.rel (%p503_p2) target bundleno = 1103 (0x44f), region = 159 }
  0x56   : > { %s509_s8 = sand.u32 1, %s2216_s12   ;;  %s2425_s24 = sand.u32 1, %s2208_s10  }
  0x57   : > { %s1689_s27 = sshll.u32 %s509_s8, 3  ;;  %s2427_s25 = sshll.u32 %s509_s8, 4 }
  0x58   : > { %s511_s23 = scalar_lea.vmem [#allocation5], %s1689_s27  ;;  %s518_s28 = scalar_lea.vmem [#allocation6], %s2427_s25 }
  0x59   : > { %s525_s20 = scalar_lea.vmem [#allocation7], %s2427_s25  ;;  %s2844_s19 = scalar_lea.vmem [#allocation8], %s2425_s24 }
  0x5a   : > { %s566_s29 = scalar_lea.vmem [#allocation10], %s2425_s24  ;;  %s2843_s9 = scalar_lea.vmem [#allocation12], %s2425_s24 }
  0x5b   : > { %p1692_p3 = scmp.ne.s32.totalorder %s2224_s14, 0 }
  0x5d   : > { %583 = sbr.rel (%p1692_p3) target bundleno = 101 (0x65), region = 175 }
  0x62   : > { %v2242_v10 = vmov 0.0   ;;  %v2243_v11 = vmov -1e+30  }
  0x63   : > { %584 = vst [vmem:[#allocation2] sm:$0x1] %v2242_v10  ;;  %586 = vst [vmem:[#allocation4] sm:$0x1] %v2242_v10 }
  0x64   : > { %585 = vst [vmem:[#allocation3] sm:$0x1] %v2243_v11 }
  0x65 PF: > { %v2049_v12 = vld [vmem:[%s511_s23] sm:$0xff]   ;;  %s2865_s3 = sld [smem:[#allocation30_spill]]  ;;  %vm747_vm0 = vcmask 130048   ;;  %v2244_v18 = vmov 0   ;;  %v2060_v24 = vld [vmem:[%s525_s20] sm:$0xff]   ;;  %vm941_vm1 = vcmask 261120  }
  0x66   : > { %1809 = vmatprep.subr.bf16.mxu0 %v2049_v12  ;;  %1937 = vmatprep.subr.bf16.mxu1 %v2049_v12  ;;  %v2054_v17 = vld [vmem:[%s525_s20 + $0x8] sm:$0xff]   ;;  %v2061_v25 = vld [vmem:[%s518_s28] sm:$0xff]   ;;  %v2841_v50 = vmov 0.0   ;;  %vm2246_vm2 = vmmov 0   ;;  %s2881_s26 = sld [smem:[#allocation31_spill]]  ;;  %s1738_s21 = sshll.u32 %s2228_s15, 1 }
  0x67   : > { %1810 = vmatpush3.bf16.msra.mxu0 %v2049_v12  ;;  %1938 = vmatpush3.bf16.msra.mxu1 %v2049_v12  ;;  %v2059_v23 = vld [vmem:[%s518_s28 + $0x8] sm:$0xff]   ;;  %s1384_s8 = sadd.s32 %s2224_s14, %s1738_s21  ;;  %p1740_p4 = scmp.ne.s32.totalorder %s2224_s14, 1 }
  0x68   : > { %2048 = vset.pattern.permute.xlu1 %v2244_v18  ;;  %2047 = vset.pattern.permute.xlu0 %v2244_v18  ;;  %v2062_v26 = vld [vmem:[%s2827_s4] sm:$0xff]   ;;  %v2063_v27 = vld [vmem:[%s2827_s4 + $0x8] sm:$0xff]   ;;  %v2064_v28 = vld [vmem:[%s2827_s4 + $0x10] sm:$0xff]   ;;  %s1739_s27 = sshll.u32 %s1384_s8, 7 }
  0x69   : > { %1847 = vmatprep.subr.bf16.mxu0 %v2054_v17  ;;  %1827 = vmatprep.subr.bf16.mxu1 %v2059_v23  ;;  %v618_v29 = vld [vmem:[%s2828_s5 + $0x68] sm:$0xff]  ;;  %v620_v30 = vld [vmem:[%s2828_s5 + $0x78] sm:$0xff]  ;;  %v617_v31 = vld [vmem:[%s2828_s5 + $0x60] sm:$0xff] }
  0x6a   : > { %688 = vperm.xlu1 %2048, %v618_v29   ;;  %698 = vperm.xlu0 %2047, %v620_v30   ;;  %v619_v32 = vld [vmem:[%s2828_s5 + $0x70] sm:$0xff]  ;;  %v2065_v33 = vld [vmem:[%s2827_s4 + $0x18] sm:$0xff]   ;;  %v2066_v34 = vld [vmem:[%s2827_s4 + $0x20] sm:$0xff]  }
  0x6b   : > { %v2050_v13 = vld [vmem:[%s2865_s3] sm:$0xff]   ;;  %v2052_v15 = vld [vmem:[%s2865_s3 + $0x8] sm:$0xff]   ;;  %v2055_v19 = vld [vmem:[%s2865_s3 + $0x10] sm:$0xff]  }
  0x6c   : > { %v2051_v14 = vld [vmem:[%s2865_s3 + $0x20] sm:$0xff]   ;;  %1811 = vmatprep.mubr.msk.bf16.mxu0 %vm747_vm0, %v2050_v13  ;;  %v2053_v16 = vld [vmem:[%s2865_s3 + $0x28] sm:$0xff]   ;;  %v2056_v20 = vld [vmem:[%s2865_s3 + $0x30] sm:$0xff]  }
  0x6d   : > { %1819 = vmatprep.mubr.msk.bf16.mxu1 %vm747_vm0, %v2051_v14  ;;  %1812 = vmatmul.mubr.msk.bf16.vlgmr.msra.gmra.mxu0 %vm747_vm0, %v2052_v15  ;;  %v2057_v21 = vld [vmem:[%s2865_s3 + $0x18] sm:$0xff]   ;;  %v615_v35 = vld [vmem:[%s2828_s5 + $0x50] sm:$0xff]  ;;  %v613_v37 = vld [vmem:[%s2828_s5 + $0x40] sm:$0xff] }
  0x6e   : > { %1820 = vmatmul.mubr.msk.bf16.vlgmr.msra.gmra.mxu1 %vm747_vm0, %v2053_v16  ;;  %1848 = vmatpush3.bf16.msra.mxu0 %v2054_v17  ;;  %v2058_v22 = vld [vmem:[%s2865_s3 + $0x38] sm:$0xff]   ;;  %v614_v38 = vld [vmem:[%s2828_s5 + $0x48] sm:$0xff]  ;;  %v2068_v40 = vld [vmem:[%s2827_s4 + $0x30] sm:$0xff]  }
  0x6f   : > { %1815 = vmatprep.mubr.msk.bf16.mxu0 %vm747_vm0, %v2055_v19  ;;  %1823 = vmatprep.mubr.msk.bf16.mxu1 %vm747_vm0, %v2056_v20  ;;  %v616_v36 = vld [vmem:[%s2828_s5 + $0x58] sm:$0xff]  ;;  %v2067_v39 = vld [vmem:[%s2827_s4 + $0x28] sm:$0xff]   ;;  %v611_v41 = vld [vmem:[%s2828_s5 + $0x30] sm:$0xff] }
  0x70   : > { %1849 = vmatprep.subr.bf16.mxu0 %v2060_v24  ;;  %1828 = vmatpush3.bf16.msra.mxu1 %v2059_v23  ;;  %v612_v42 = vld [vmem:[%s2828_s5 + $0x38] sm:$0xff]  ;;  %v609_v43 = vld [vmem:[%s2828_s5 + $0x20] sm:$0xff]  ;;  %v610_v44 = vld [vmem:[%s2828_s5 + $0x28] sm:$0xff] }
  0x71   : > { %1829 = vmatprep.subr.bf16.mxu1 %v2061_v25  ;;  %683 = vperm.xlu1 %2048, %v617_v31   ;;  %v2069_v45 = vld [vmem:[%s2827_s4 + $0x38] sm:$0xff]   ;;  %v607_v46 = vld [vmem:[%s2828_s5 + $0x10] sm:$0xff]  ;;  %v605_v48 = vld [vmem:[%s2828_s5] sm:$0xff] }
  0x72   : > { %1850 = vmatpush3.bf16.msra.mxu0 %v2060_v24  ;;  %693 = vperm.xlu0 %2047, %v619_v32   ;;  %v608_v47 = vld [vmem:[%s2828_s5 + $0x18] sm:$0xff]  ;;  %v606_v49 = vld [vmem:[%s2828_s5 + $0x8] sm:$0xff] }
  0x73   : > { %1902 = vmatprep.subr.mxu0 %v2841_v50 }
  0x74   : > { %1830 = vmatpush3.bf16.msra.mxu1 %v2061_v25 }
  0x75   : > { %1816 = vmatmul.mubr.msk.bf16.gmra.mxu0 %vm747_vm0, %v2057_v21  ;;  %673 = vperm.xlu1 %2048, %v615_v35  }
  0x76   : > { %1824 = vmatmul.mubr.msk.bf16.gmra.mxu1 %vm747_vm0, %v2058_v22  ;;  %1851 = vmatprep.mubr.msk.bf16.mxu0 %vm941_vm1, %v2062_v26 }
  0x77   : > { %1831 = vmatprep.mubr.msk.bf16.mxu1 %vm941_vm1, %v2062_v26  ;;  %678 = vperm.xlu0 %2047, %v616_v36  }
  0x78   : > { %1867 = vmatprep.subr.mxu1 %v2841_v50 }
  0x79   : > { %663 = vperm.xlu1 %2048, %v613_v37  }
  0x7b   : > { %668 = vperm.xlu0 %2047, %v614_v38  }
  0x7d   : > { %1852 = vmatmul.mubr.msk.bf16.vlgmr.msra.gmra.mxu0 %vm941_vm1, %v2063_v27  ;;  %653 = vperm.xlu1 %2048, %v611_v41  }
  0x7e   : > { %1832 = vmatmul.mubr.msk.bf16.vlgmr.msra.gmra.mxu1 %vm941_vm1, %v2063_v27  ;;  %1855 = vmatprep.mubr.msk.bf16.mxu0 %vm941_vm1, %v2064_v28 }
  0x7f   : > { %1835 = vmatprep.mubr.msk.bf16.mxu1 %vm941_vm1, %v2064_v28  ;;  %658 = vperm.xlu0 %2047, %v612_v42  }
  0x81   : > { %643 = vperm.xlu1 %2048, %v609_v43  }
  0x83   : > { %648 = vperm.xlu0 %2047, %v610_v44  }
  0x85   : > { %1856 = vmatmul.mubr.msk.bf16.gmra.mxu0 %vm941_vm1, %v2065_v33  ;;  %633 = vperm.xlu1 %2048, %v607_v46  }
  0x86   : > { %1836 = vmatmul.mubr.msk.bf16.gmra.mxu1 %vm941_vm1, %v2065_v33  ;;  %1859 = vmatprep.mubr.msk.bf16.mxu0 %vm941_vm1, %v2066_v34 }
  0x87   : > { %1839 = vmatprep.mubr.msk.bf16.mxu1 %vm941_vm1, %v2066_v34  ;;  %638 = vperm.xlu0 %2047, %v608_v47  }
  0x89   : > { %623 = vperm.xlu1 %2048, %v605_v48  }
  0x8b   : > { %628 = vperm.xlu0 %2047, %v606_v49  }
  0x8d   : > { %1860 = vmatmul.mubr.msk.bf16.gmra.mxu0 %vm941_vm1, %v2067_v39 }
  0x8e   : > { %1840 = vmatmul.mubr.msk.bf16.gmra.mxu1 %vm941_vm1, %v2067_v39  ;;  %1863 = vmatprep.mubr.msk.bf16.mxu0 %vm941_vm1, %v2068_v40 }
  0x8f   : > { %1843 = vmatprep.mubr.msk.bf16.mxu1 %vm941_vm1, %v2068_v40 }
  0x95   : > { %1864 = vmatmul.mubr.msk.bf16.gmra.mxu0 %vm941_vm1, %v2069_v45 }
  0x96   : > { %1844 = vmatmul.mubr.msk.bf16.gmra.mxu1 %vm941_vm1, %v2069_v45  ;;  %1934 = vmatprep.mubr.msk.f32.mxu0 %vm2246_vm2, %v2841_v50 }
  0x97   : > { %1899 = vmatprep.mubr.msk.f32.mxu1 %vm2246_vm2, %v2841_v50 }
  0xe5   : > { %v699_v11 = vpop.permute.xlu0 %698  ;;  %v689_v14 = vpop.permute.xlu1 %688 }
  0xec   : > { %v684_v22 = vpop.permute.xlu1 %683 }
  0xed   : > { %v694_v19 = vpop.permute.xlu0 %693 }
  0xf0   : > { %v674_v30 = vpop.permute.xlu1 %673 }
  0xf2   : > { %v679_v27 = vpop.permute.xlu0 %678 }
  0xf4   : > { %v664_v38 = vpop.permute.xlu1 %663 }
  0xf6   : > { %v669_v35 = vpop.permute.xlu0 %668 }
 0x12d   : > { %v2567_v51 = vpop.f32.mrf.mxu0 }
 0x12e   : > { %v2569_v52 = vpop.f32.mrf.mxu1 }
 0x12f   : > { %v2571_v53 = vpop.f32.mrf.mxu0 }
 0x130   : > { %2866 = vst [vmem:[#allocation20_spill] sm:$0xff] %v2571_v53  ;;  %v2573_v54 = vpop.f32.mrf.mxu1 }
 0x131   : > { %v2575_v55 = vpop.f32.mrf.mxu0 }
 0x132   : > { %v2577_v56 = vpop.f32.mrf.mxu1 }
 0x133   : > { %v2579_v57 = vpop.f32.mrf.mxu0 }
 0x134   : > { %v2581_v58 = vpop.f32.mrf.mxu1 }
 0x135   : > { %v2583_v59 = vpop.f32.mrf.mxu0 }
 0x136   : > { %v1825_v60 = vpop.f32.mrf.mxu1 }
 0x137   : > { %v2585_v61 = vpop.f32.mrf.mxu0  ;;  %v863_v39 = vadd.f32 %v1825_v60, %v694_v19  ;;  %v2873_v19 = vmov 0.0  }
 0x138   : > { %v854_v62 = vpop.f32.mrf.mxu1 }
 0x139   : > { %v2587_v63 = vpop.f32.mrf.mxu0  ;;  %v855_v48 = vadd.f32 %v854_v62, %v684_v22 }
 0x13a   : > { %v1826_v0 = vpop.f32.mrf.mxu1 }
 0x13b   : > { %v2589_v1 = vpop.f32.mrf.mxu0  ;;  %v866_v40 = vadd.f32 %v1826_v0, %v699_v11 }
 0x13c   : > { %v857_v2 = vpop.f32.mrf.mxu1 }
 0x13d   : > { %v2593_v4 = vpop.f32.mrf.mxu0  ;;  %v858_v41 = vadd.f32 %v857_v2, %v689_v14  ;;  %v847_v14 = vadd.f32 %v2569_v52, %v674_v30 }
 0x13e   : > { %v2591_v3 = vpop.f32.mrf.mxu1  ;;  %2868 = vst [vmem:[#allocation22_spill] sm:$0xff] %v2593_v4  ;;  %v850_v4 = vadd.f32 %v2577_v56, %v679_v27 }
 0x13f   : > { %2867 = vst [vmem:[#allocation21_spill] sm:$0xff] %v2591_v3  ;;  %v2597_v6 = vpop.f32.mrf.mxu0  ;;  %v654_v3 = vpop.permute.xlu1 %653 }
 0x140   : > { %v2595_v5 = vpop.f32.mrf.mxu1  ;;  %2870 = vst [vmem:[#allocation24_spill] sm:$0xff] %v2597_v6  ;;  %v659_v6 = vpop.permute.xlu0 %658 }
 0x141   : > { %2869 = vst [vmem:[#allocation23_spill] sm:$0xff] %v2595_v5  ;;  %v2601_v8 = vpop.f32.mrf.mxu0 }
 0x142   : > { %v2599_v7 = vpop.f32.mrf.mxu1 }
 0x143   : > { %v2605_v10 = vpop.f32.mrf.mxu0 }
 0x144   : > { %v2603_v9 = vpop.f32.mrf.mxu1  ;;  %2872 = vst [vmem:[#allocation26_spill] sm:$0xff] %v2605_v10  ;;  %v649_v56 = vpop.permute.xlu0 %648 }
 0x145   : > { %2871 = vst [vmem:[#allocation25_spill] sm:$0xff] %v2603_v9  ;;  %v2609_v13 = vpop.f32.mrf.mxu0 }
 0x146   : > { %v2607_v12 = vpop.f32.mrf.mxu1 }
 0x147   : > { %v2613_v16 = vpop.f32.mrf.mxu0 }
 0x148   : > { %v2611_v15 = vpop.f32.mrf.mxu1 }
 0x149   : > { %v2617_v18 = vpop.f32.mrf.mxu0 }
 0x14a   : > { %v2615_v17 = vpop.f32.mrf.mxu1 }
 0x14b   : > { %v2621_v21 = vpop.f32.mrf.mxu0 }
 0x14c   : > { %v2619_v20 = vpop.f32.mrf.mxu1 }
 0x14d   : > { %v1861_v24 = vpop.f32.mrf.mxu0 }
 0x14e   : > { %v1841_v23 = vpop.f32.mrf.mxu1 }
 0x14f   : > { %v2625_v26 = vpop.f32.mrf.mxu0 }
 0x150   : > { %v2623_v25 = vpop.f32.mrf.mxu1 }
 0x151   : > { %v1862_v29 = vpop.f32.mrf.mxu0 }
 0x152   : > { %v1842_v28 = vpop.f32.mrf.mxu1  ;;  %v1219_v22 = vadd.f32 %v1862_v29, %v850_v4 }
 0x153   : > { %v1148_v32 = vpop.f32.mrf.mxu0  ;;  %v1187_v62 = vadd.f32 %v1842_v28, %v850_v4  ;;  %v839_v28 = vadd.f32 %v2573_v54, %v664_v38 }
 0x154   : > { %v1035_v31 = vpop.f32.mrf.mxu1 }
 0x155   : > { %v1865_v34 = vpop.f32.mrf.mxu0  ;;  %v1203_v4 = vmax.f32 %v1187_v62, 0.0  ;;  %v1184_v54 = vadd.f32 %v2623_v25, %v839_v28  ;;  %v826_v25 = vadd.f32 %v2589_v1, %v649_v56  ;;  %v2878_v62 = vld [vmem:[#allocation26_spill] sm:$0xff] }
 0x156   : > { %v1845_v33 = vpop.f32.mrf.mxu1  ;;  %v1222_v45 = vadd.f32 %v1865_v34, %v863_v39 }
 0x157   : > { %v1161_v37 = vpop.f32.mrf.mxu0  ;;  %v1190_v44 = vadd.f32 %v1845_v33, %v863_v39  ;;  %v1200_v38 = vmax.f32 %v1184_v54, 0.0 }
 0x158   : > { %v1048_v36 = vpop.f32.mrf.mxu1  ;;  %v1238_v0 = vmax.f32 %v1222_v45, 0.0  ;;  %v1220_v11 = vadd.f32 %v1161_v37, %v855_v48 }
 0x159   : > { %v1866_v43 = vpop.f32.mrf.mxu0  ;;  %v1206_v60 = vmax.f32 %v1190_v44, 0.0  ;;  %v1188_v2 = vadd.f32 %v1048_v36, %v855_v48  ;;  %v831_v36 = vadd.f32 %v2583_v59, %v654_v3  ;;  %v2875_v48 = vld [vmem:[#allocation22_spill] sm:$0xff] }
 0x15a   : > { %v1846_v42 = vpop.f32.mrf.mxu1  ;;  %v1223_v47 = vadd.f32 %v1866_v43, %v866_v40  ;;  %v1236_v27 = vmax.f32 %v1220_v11, 0.0  ;;  %v2877_v11 = vld [vmem:[#allocation25_spill] sm:$0xff] }
 0x15b   : > { %v1191_v46 = vadd.f32 %v1846_v42, %v866_v40  ;;  %v1164_v50 = vpop.f32.mrf.mxu0  ;;  %v1204_v52 = vmax.f32 %v1188_v2, 0.0  ;;  %v1182_v3 = vadd.f32 %v2607_v12, %v831_v36  ;;  %v1181_v40 = vadd.f32 %v2619_v20, %v826_v25 }
 0x15c   : > { %v1051_v49 = vpop.f32.mrf.mxu1  ;;  %v1239_v10 = vmax.f32 %v1223_v47, 0.0  ;;  %v1221_v53 = vadd.f32 %v1164_v50, %v858_v41  ;;  %v842_v50 = vadd.f32 %v2581_v58, %v669_v35  ;;  %v1235_v58 = vmax.f32 %v1219_v22, 0.0 }
 0x15d   : > { %v1207_v5 = vmax.f32 %v1191_v46, 0.0  ;;  %v1189_v9 = vadd.f32 %v1051_v49, %v858_v41  ;;  %v1216_v35 = vadd.f32 %v2625_v26, %v839_v28  ;;  %v1214_v26 = vadd.f32 %v2609_v13, %v831_v36 }
 0x15e   : > { %1903 = vmatpush3.msra.mxu0 %v1239_v10  ;;  %v1237_v34 = vmax.f32 %v1221_v53, 0.0  ;;  %v1218_v10 = vadd.f32 %v1861_v24, %v847_v14  ;;  %v644_v53 = vpop.permute.xlu1 %643  ;;  %v1217_v29 = vadd.f32 %v1148_v32, %v842_v50  ;;  %v1213_v41 = vadd.f32 %v2621_v21, %v826_v25 }
 0x15f   : > { %1868 = vmatpush3.msra.mxu1 %v1207_v5  ;;  %1904 = vmatprep.subr.mxu0 %v2873_v19  ;;  %v1205_v33 = vmax.f32 %v1189_v9, 0.0  ;;  %v1186_v5 = vadd.f32 %v1841_v23, %v847_v14  ;;  %v1185_v9 = vadd.f32 %v1035_v31, %v842_v50  ;;  %v834_v23 = vadd.f32 %v2587_v63, %v659_v6  ;;  %v639_v31 = vpop.permute.xlu0 %638  ;;  %v2879_v50 = vld [vmem:[#allocation23_spill] sm:$0xff] }
 0x160   : > { %1869 = vmatprep.subr.mxu1 %v2873_v19  ;;  %1905 = vmatpush3.msra.mxu0 %v1238_v0  ;;  %v1234_v30 = vmax.f32 %v1218_v10, 0.0  ;;  %v1233_v37 = vmax.f32 %v1217_v29, 0.0  ;;  %v1232_v39 = vmax.f32 %v1216_v35, 0.0  ;;  %v818_v12 = vadd.f32 %v2575_v55, %v639_v31 }
 0x161   : > { %1870 = vmatpush3.msra.mxu1 %v1206_v60  ;;  %1906 = vmatprep.subr.mxu0 %v2873_v19  ;;  %v1202_v24 = vmax.f32 %v1186_v5, 0.0  ;;  %v1183_v63 = vadd.f32 %v2615_v17, %v834_v23  ;;  %v1215_v6 = vadd.f32 %v2617_v18, %v834_v23  ;;  %v1201_v32 = vmax.f32 %v1185_v9, 0.0  ;;  %v2880_v5 = vld [vmem:[#allocation24_spill] sm:$0xff] }
 0x162   : > { %1871 = vmatprep.subr.mxu1 %v2873_v19  ;;  %1907 = vmatpush3.msra.mxu0 %v1237_v34  ;;  %v634_v59 = vpop.permute.xlu1 %633  ;;  %v823_v17 = vadd.f32 %v2585_v61, %v644_v53  ;;  %v1198_v61 = vmax.f32 %v1182_v3, 0.0  ;;  %v1230_v42 = vmax.f32 %v1214_v26, 0.0  ;;  %v1179_v21 = vadd.f32 %v2599_v7, %v818_v12  ;;  %v2876_v7 = vld [vmem:[#allocation20_spill] sm:$0xff]  ;;  %v1396_v26 = vld [vmem:[#allocation4] sm:$0x1] }
 0x163   : > { %1872 = vmatpush3.msra.mxu1 %v1205_v33  ;;  %1908 = vmatprep.subr.mxu0 %v2873_v19  ;;  %v1199_v1 = vmax.f32 %v1183_v63, 0.0  ;;  %v1231_v18 = vmax.f32 %v1215_v6, 0.0  ;;  %v629_v13 = vpop.permute.xlu0 %628  ;;  %v815_v20 = vadd.f32 %v2567_v51, %v634_v59  ;;  %v1211_v45 = vadd.f32 %v2601_v8, %v818_v12  ;;  %v2874_v51 = vld [vmem:[#allocation21_spill] sm:$0xff] }
 0x164   : > { %1873 = vmatprep.subr.mxu1 %v2873_v19  ;;  %1909 = vmatpush3.msra.mxu0 %v1236_v27  ;;  %v1180_v43 = vadd.f32 %v2611_v15, %v823_v17  ;;  %v1212_v44 = vadd.f32 %v2613_v16, %v823_v17  ;;  %v1197_v46 = vmax.f32 %v1181_v40, 0.0  ;;  %v1229_v47 = vmax.f32 %v1213_v41, 0.0 }
 0x165   : > { %1874 = vmatpush3.msra.mxu1 %v1204_v52  ;;  %1910 = vmatprep.subr.mxu0 %v2873_v19  ;;  %v810_v15 = vadd.f32 %v2579_v57, %v629_v13  ;;  %v1178_v16 = vadd.f32 %v2874_v51, %v815_v20  ;;  %v1210_v49 = vadd.f32 %v2875_v48, %v815_v20  ;;  %v1195_v2 = vmax.f32 %v1179_v21, 0.0 }
 0x166   : > { %1875 = vmatprep.subr.mxu1 %v2873_v19  ;;  %1911 = vmatpush3.msra.mxu0 %v1235_v58  ;;  %v624_v55 = vpop.permute.xlu1 %623  ;;  %v1196_v60 = vmax.f32 %v1180_v43, 0.0  ;;  %v1228_v0 = vmax.f32 %v1212_v44, 0.0  ;;  %v1227_v57 = vmax.f32 %v1211_v45, 0.0  ;;  %v1381_v58 = vlaneseq }
 0x167   : > { %1876 = vmatpush3.msra.mxu1 %v1203_v4  ;;  %1912 = vmatprep.subr.mxu0 %v2873_v19  ;;  %v807_v8 = vadd.f32 %v2876_v7, %v624_v55  ;;  %v1177_v14 = vadd.f32 %v2877_v11, %v810_v15  ;;  %v1209_v22 = vadd.f32 %v2878_v62, %v810_v15  ;;  %v1194_v33 = vmax.f32 %v1178_v16, 0.0  ;;  %v1240_v4 = vld [vmem:[%s2881_s26] sm:$0xff] }
 0x168   : > { %1877 = vmatprep.subr.mxu1 %v2873_v19  ;;  %1913 = vmatpush3.msra.mxu0 %v1234_v30  ;;  %v1226_v34 = vmax.f32 %v1210_v49, 0.0  ;;  %v1382_v9 = vand.u32 127, %v1381_v58  ;;  %v1386_v29 = vstv %s1739_s27  ;;  %v1391_v30 = vld [vmem:[#allocation2] sm:$0x1] }
 0x169   : > { %1878 = vmatpush3.msra.mxu1 %v1202_v24  ;;  %1914 = vmatprep.subr.mxu0 %v2873_v19  ;;  %v1176_v56 = vadd.f32 %v2879_v50, %v807_v8  ;;  %v1208_v10 = vadd.f32 %v2880_v5, %v807_v8  ;;  %v1193_v52 = vmax.f32 %v1177_v14, 0.0  ;;  %v1225_v27 = vmax.f32 %v1209_v22, 0.0  ;;  %v1394_v24 = vld [vmem:[#allocation3] sm:$0x1] }
 0x16a   : > { %1879 = vmatprep.subr.mxu1 %v2873_v19  ;;  %1915 = vmatpush3.msra.mxu0 %v1233_v37  ;;  %v1387_v23 = vadd.s32 %v1386_v29, %v1382_v9 }
 0x16b   : > { %1880 = vmatpush3.msra.mxu1 %v1201_v32  ;;  %1916 = vmatprep.subr.mxu0 %v2873_v19  ;;  %v1192_v28 = vmax.f32 %v1176_v56, 0.0  ;;  %v1224_v53 = vmax.f32 %v1208_v10, 0.0 }
 0x16c   : > { %1881 = vmatprep.subr.mxu1 %v2873_v19  ;;  %1917 = vmatpush3.msra.mxu0 %v1232_v39  ;;  %vm1388_vm3 = vcmp.lt.s32.totalorder %v1387_v23, 300 }
 0x16d   : > { %1882 = vmatpush3.msra.mxu1 %v1200_v38  ;;  %1918 = vmatprep.subr.mxu0 %v2873_v19 }
 0x16e   : > { %1883 = vmatprep.subr.mxu1 %v2873_v19  ;;  %1919 = vmatpush3.msra.mxu0 %v1231_v18 }
 0x16f   : > { %1884 = vmatpush3.msra.mxu1 %v1199_v1  ;;  %1920 = vmatprep.subr.mxu0 %v2873_v19 }
 0x170   : > { %1885 = vmatprep.subr.mxu1 %v2873_v19  ;;  %1921 = vmatpush3.msra.mxu0 %v1230_v42 }
 0x171   : > { %1886 = vmatpush3.msra.mxu1 %v1198_v61  ;;  %1922 = vmatprep.subr.mxu0 %v2873_v19 }
 0x172   : > { %1887 = vmatprep.subr.mxu1 %v2873_v19  ;;  %1923 = vmatpush3.msra.mxu0 %v1229_v47 }
 0x173   : > { %1888 = vmatpush3.msra.mxu1 %v1197_v46  ;;  %1924 = vmatprep.subr.mxu0 %v2873_v19 }
 0x174   : > { %1889 = vmatprep.subr.mxu1 %v2873_v19  ;;  %1925 = vmatpush3.msra.mxu0 %v1228_v0 }
 0x175   : > { %1890 = vmatpush3.msra.mxu1 %v1196_v60  ;;  %1926 = vmatprep.subr.mxu0 %v2873_v19 }
 0x176   : > { %1891 = vmatprep.subr.mxu1 %v2873_v19  ;;  %1927 = vmatpush3.msra.mxu0 %v1227_v57 }
 0x177   : > { %1892 = vmatpush3.msra.mxu1 %v1195_v2  ;;  %1928 = vmatprep.subr.mxu0 %v2873_v19 }
 0x178   : > { %1893 = vmatprep.subr.mxu1 %v2873_v19  ;;  %1929 = vmatpush3.msra.mxu0 %v1226_v34 }
 0x179   : > { %1894 = vmatpush3.msra.mxu1 %v1194_v33  ;;  %1930 = vmatprep.subr.mxu0 %v2873_v19 }
 0x17a   : > { %1895 = vmatprep.subr.mxu1 %v2873_v19  ;;  %1931 = vmatpush3.msra.mxu0 %v1225_v27 }
 0x17b   : > { %1896 = vmatpush3.msra.mxu1 %v1193_v52  ;;  %1932 = vmatprep.subr.mxu0 %v2873_v19 }
 0x17c   : > { %1897 = vmatprep.subr.mxu1 %v2873_v19  ;;  %1933 = vmatpush3.msra.mxu0 %v1224_v53 }
 0x17d   : > { %1898 = vmatpush3.msra.mxu1 %v1192_v28  ;;  %1935 = vmatmul.mubr.f32.vlgmr.msra.gmra.mxu0 %v1240_v4 }
 0x17e   : > { %1900 = vmatmul.mubr.f32.vlgmr.msra.gmra.mxu1 %v1240_v4 }
 0x23d   : > { %v1377_v54 = vpop.f32.mrf.mxu0 }
 0x23e   : > { %v1307_v35 = vpop.f32.mrf.mxu1  ;;  %v1390_v36 = vsel %vm1388_vm3, %v1377_v54, -1e+30 }
 0x23f   : > { %v1389_v31 = vsel %vm1388_vm3, %v1307_v35, 0.0  ;;  %v1395_v63 = vmax.f32 %v1394_v24, %v1390_v36  ;;  %v1936_v19 = vpop.f32.mrf.mxu0 }
 0x240   : > { %v1392_v6 = vadd.f32 %v1391_v30, %v1389_v31  ;;  %v1901_v32 = vpop.f32.mrf.mxu1 }
 0x241   : > { %v1397_v37 = vsub.f32 %v1394_v24, %v1395_v63  ;;  %v1401_v25 = vsub.f32 %v1390_v36, %v1395_v63  ;;  %1406 = vst [vmem:[#allocation3] sm:$0x1] %v1395_v63 }
 0x242   : > { %1393 = vst [vmem:[#allocation2] sm:$0x1] %v1392_v6 }
 0x243   : > { %v1398_v59 = vmul.f32 1.442695, %v1397_v37  ;;  %v1402_v3 = vmul.f32 1.442695, %v1401_v25 }
 0x245   : > { %2070 = vpow2.f32 %v1398_v59 }
 0x246   : > { %2072 = vpow2.f32 %v1402_v3 }
 0x252   : > { %v2071_v38 = vpop.eup %2070 }
 0x253   : > { %v1400_v39 = vmul.f32 %v2071_v38, %v1396_v26  ;;  %v2073_v17 = vpop.eup %2072  ;;  %1410 = sbr.rel (%p1740_p4) target bundleno = 1030 (0x406), region = 179 }
 0x255   : > { %v1404_v1 = vadd.f32 %v2073_v17, %v1400_v39 }
 0x257   : > { %1405 = vst [vmem:[#allocation4] sm:$0x1] %v1404_v1 }
 0x258   : > { %v1411_v18 = vld [vmem:[#allocation2] sm:$0x1]  ;;  %vm1412_vm4 = vcmask 1040384   ;;  %v1423_v40 = vld [vmem:[#allocation3] sm:$0x1] }
 0x259   : > { %v1413_v41 = vsel %vm1412_vm4, %v1411_v18, 0.0  ;;  %v1424_v12 = vsel %vm1412_vm4, %v1423_v40, -inf }
 0x25a   : > { %1414 = vadd.xlane.f32.xlu0 %v1413_v41 }
 0x25e   : > { %1425 = vmax.xlane.f32.xlu0 %v1424_v12  ;;  %v1434_v7 = vld [vmem:[#allocation4] sm:$0x1] }
 0x2e3   : > { %v1415_v13 = vpop.xlane.xlu0 %1414 }
 0x2e4   : > { %v1416_v61 = vrot.slane %v1415_v13, 4 }
 0x2e6   : > { %v1417_v42 = vadd.f32 %v1416_v61, %v1415_v13 }
 0x2e7   : > { %v1426_v43 = vpop.xlane.xlu0 %1425 }
 0x2e8   : > { %v1418_v44 = vrot.slane %v1417_v42, 2  ;;  %v1427_v20 = vrot.slane %v1426_v43, 4 }
 0x2ea   : > { %v1428_v55 = vmax.f32 %v1426_v43, %v1427_v20  ;;  %v1419_v21 = vadd.f32 %v1418_v44, %v1417_v42 }
 0x2ec   : > { %v1429_v45 = vrot.slane %v1428_v55, 2  ;;  %v1420_v46 = vrot.slane %v1419_v21, 1 }
 0x2ee   : > { %v1430_v47 = vmax.f32 %v1428_v55, %v1429_v45  ;;  %v1421_v15 = vadd.f32 %v1420_v46, %v1419_v21 }
 0x2f0   : > { %1939 = vpush %v1421_v15  ;;  %v1431_v51 = vrot.slane %v1430_v47, 1 }
 0x2f2   : > { %v1432_v16 = vmax.f32 %v1430_v47, %v1431_v51 }
 0x2f4   : > { %1941 = vpush %v1432_v16 }
 0x321   : > { %s1940_s14 = spop %1939 }
 0x322   : > { %v1450_v48 = vstv %s1940_s14 }
 0x323   : > { %1451 = vst [vmem:[%s2844_s19] sm:$0x1] %v1450_v48 }
 0x325   : > { %s1942_s23 = spop %1941 }
 0x326   : > { %v1435_v49 = vstv %s1942_s23 }
 0x327   : > { %v1436_v60 = vsub.f32 %v1423_v40, %v1435_v49  ;;  %1452 = vst [vmem:[%s566_s29] sm:$0x1] %v1435_v49 }
 0x329   : > { %v1437_v0 = vmul.f32 1.442695, %v1436_v60 }
 0x32b   : > { %2074 = vpow2.f32 %v1437_v0 }
 0x338   : > { %v2075_v8 = vpop.eup %2074 }
 0x339   : > { %v1439_v2 = vmul.f32 %v2075_v8, %v1434_v7 }
 0x33b   : > { %v1440_v57 = vsel %vm1412_vm4, %v1439_v2, 0.0 }
 0x33c   : > { %1441 = vadd.xlane.f32.xlu1 %v1440_v57 }
 0x3c5   : > { %v1442_v11 = vpop.xlane.xlu1 %1441 }
 0x3c6   : > { %v1443_v14 = vrot.slane %v1442_v11, 4 }
 0x3c8   : > { %v1444_v62 = vadd.f32 %v1443_v14, %v1442_v11 }
 0x3ca   : > { %v1445_v22 = vrot.slane %v1444_v62, 2 }
 0x3cc   : > { %v1446_v33 = vadd.f32 %v1445_v22, %v1444_v62 }
 0x3ce   : > { %v1447_v34 = vrot.slane %v1446_v33, 1 }
 0x3d0   : > { %v1448_v50 = vadd.f32 %v1447_v34, %v1446_v33 }
 0x3d2   : > { %1943 = vpush %v1448_v50 }
 0x403   : > { %s1944_s12 = spop %1943 }
 0x404   : > { %v1453_v56 = vstv %s1944_s12 }
 0x405   : > { %1454 = vst [vmem:[%s2843_s9] sm:$0x1] %v1453_v56 }
 0x406 PF: > { %s2882_s17 = sadd.s32 4294967295, %s2240_s18   ;;  %s2707_s28 = sshll.u32 %s2228_s15, 4 }
 0x407   : > { %s2704_s25 = sand.u32 1, %s2882_s17   ;;  %s2883_s26 = sld [smem:[#allocation33_spill]] }
 0x408   : > { %s1489_s8 = sshll.u32 %s566_s29, 4  ;;  %s2884_s23 = sld [smem:[#allocation32_spill]]  ;;  %s1490_s8 = int_to_ptr.vmem [resolvable:$true] %s1489_s8 }
 0x409   : > { %s2076_s9 = scalar_lea.vmem %s1490_s8, 16  ;;  %s2247_s15 = smov [#allocation10]  }
 0x40a   : > { %p2077_p5 = scmp.ne.s32.totalorder %s1490_s8, %s2076_s9  ;;  %s2080_s19 = sshll.u32 %s2247_s15, 4  ;;  %s2081_s19 = int_to_ptr.vmem [resolvable:$false] %s2080_s19 }
 0x40b   : > { %s2082_s20 = scalar_lea.vmem %s2081_s19, 32  ;;  %p2083_p8 = scmp.lt.s32.totalorder %s1490_s8, %s2081_s19 }
 0x40c   : > { %p2078_p6 = pnand %p2077_p5, %p2383_p9  ;;  %p2084_p10 = scmp.lt.s32.totalorder %s2082_s20, %s2076_s9 }
 0x40d   : > { %s2713_s21 = scalar_lea.hbm %s2883_s26, %s2707_s28 }
 0x40e   : > { %s2721_s12 = scalar_lea.hbm %s2884_s23, %s2707_s28  ;;  %p2079_p7 = pneg %p2078_p6 }
 0x40f   : > { %p2085_p11 = por %p2084_p10, %p2083_p8 }
 0x411   : > { %p2086_p13 = pnand %p2085_p11, %p2079_p7 }
 0x413   : > { %2089 = shalt.err (!%p2086_p13)
}
 0x414   : > { %s2090_s29 = scalar_lea.hbm %s2713_s21, 16  ;;  %s2094_s14 = scalar_lea.hbm %s2883_s26, 32 }
 0x415   : > { %p2091_p0 = scmp.ne.s32.totalorder %s2713_s21, %s2090_s29  ;;  %p2095_p3 = scmp.lt.s32.totalorder %s2713_s21, %s2883_s26 }
 0x416   : > { %p2096_p4 = scmp.lt.s32.totalorder %s2094_s14, %s2090_s29 }
 0x417   : > { %p2092_p1 = pnand %p2091_p0, %p2383_p9 }
 0x418   : > { %p2097_p5 = por %p2096_p4, %p2095_p3 }
 0x419   : > { %p2093_p2 = pneg %p2092_p1 }
 0x41b   : > { %p2098_p6 = pnand %p2097_p5, %p2093_p2 }
 0x41d   : > { %2101 = shalt.err (!%p2098_p6)
}
 0x41e   : > { %s2885_s19 = scalar_lea.sflag [#allocation11], %s2704_s25  ;;  %s2886_s9 = scalar_lea.vmem [#allocation8], %s2425_s24 }
 0x41f   : > { %1946 = dma.vmem_to_hbm [thread:$0]  (%p2383_p9), %s1490_s8, 16, %s2713_s21, %s2885_s19  }
 0x420   : > { %s1476_s20 = sshll.u32 %s2886_s9, 4  ;;  %s2887_s27 = sld [smem:[#allocation34_spill]]  ;;  %s1477_s20 = int_to_ptr.vmem [resolvable:$true] %s1476_s20 }
 0x421   : > { %s2888_s14 = scalar_lea.vmem [#allocation12], %s2425_s24  ;;  %s1456_s0 = scalar_lea.sflag [#allocation9], %s2425_s24 }
 0x422   : > { %s1502_s15 = sshll.u32 %s2888_s14, 4  ;;  %s2102_s1 = scalar_lea.vmem %s1477_s20, 16  ;;  %s1503_s15 = int_to_ptr.vmem [resolvable:$true] %s1502_s15 }
 0x423   : > { %p2103_p7 = scmp.ne.s32.totalorder %s1477_s20, %s2102_s1  ;;  %s2248_s2 = smov [#allocation8]  }
 0x424   : > { %s2106_s3 = sshll.u32 %s2248_s2, 4  ;;  %s2107_s3 = int_to_ptr.vmem [resolvable:$false] %s2106_s3 }
 0x425   : > { %p2104_p8 = pnand %p2103_p7, %p2383_p9  ;;  %s2108_s21 = scalar_lea.vmem %s2107_s3, 32 }
 0x426   : > { %s2748_s29 = scalar_lea.hbm %s2887_s27, %s2707_s28  ;;  %p2109_p11 = scmp.lt.s32.totalorder %s1477_s20, %s2107_s3 }
 0x427   : > { %p2105_p10 = pneg %p2104_p8  ;;  %p2110_p13 = scmp.lt.s32.totalorder %s2108_s21, %s2102_s1 }
 0x429   : > { %p2111_p0 = por %p2110_p13, %p2109_p11 }
 0x42b   : > { %p2112_p1 = pnand %p2111_p0, %p2105_p10 }
 0x42d   : > { %2115 = shalt.err (!%p2112_p1)
}
 0x42e   : > { %s2116_s28 = scalar_lea.hbm %s2721_s12, 16  ;;  %s2120_s2 = scalar_lea.hbm %s2884_s23, 32 }
 0x42f   : > { %p2117_p2 = scmp.ne.s32.totalorder %s2721_s12, %s2116_s28  ;;  %p2121_p5 = scmp.lt.s32.totalorder %s2721_s12, %s2884_s23 }
 0x430   : > { %p2122_p6 = scmp.lt.s32.totalorder %s2120_s2, %s2116_s28 }
 0x431   : > { %p2118_p3 = pnand %p2117_p2, %p2383_p9 }
 0x432   : > { %p2123_p7 = por %p2122_p6, %p2121_p5 }
 0x433   : > { %p2119_p4 = pneg %p2118_p3 }
 0x435   : > { %p2124_p8 = pnand %p2123_p7, %p2119_p4 }
 0x437   : > { %2127 = shalt.err (!%p2124_p8)
}
 0x438   : > { %1945 = dma.vmem_to_hbm [thread:$0]  (%p2383_p9), %s1477_s20, 16, %s2721_s12, %s1456_s0  }
 0x439   : > { %s2128_s1 = scalar_lea.vmem %s1503_s15, 16  ;;  %s2249_s3 = smov [#allocation12]  }
 0x43a   : > { %p2129_p10 = scmp.ne.s32.totalorder %s1503_s15, %s2128_s1  ;;  %s2132_s22 = sshll.u32 %s2249_s3, 4  ;;  %s2133_s22 = int_to_ptr.vmem [resolvable:$false] %s2132_s22 }
 0x43b   : > { %s2134_s17 = scalar_lea.vmem %s2133_s22, 32  ;;  %p2135_p0 = scmp.lt.s32.totalorder %s1503_s15, %s2133_s22 }
 0x43c   : > { %p2130_p11 = pnand %p2129_p10, %p2383_p9  ;;  %p2136_p1 = scmp.lt.s32.totalorder %s2134_s17, %s2128_s1 }
 0x43e   : > { %p2131_p13 = pneg %p2130_p11  ;;  %p2137_p2 = por %p2136_p1, %p2135_p0 }
 0x440   : > { %p2138_p3 = pnand %p2137_p2, %p2131_p13 }
 0x442   : > { %2141 = shalt.err (!%p2138_p3)
}
 0x443   : > { %s2142_s0 = scalar_lea.hbm %s2748_s29, 16  ;;  %s2146_s14 = scalar_lea.hbm %s2887_s27, 32 }
 0x444   : > { %p2143_p4 = scmp.ne.s32.totalorder %s2748_s29, %s2142_s0  ;;  %p2147_p7 = scmp.lt.s32.totalorder %s2748_s29, %s2887_s27 }
 0x445   : > { %p2148_p8 = scmp.lt.s32.totalorder %s2146_s14, %s2142_s0 }
 0x446   : > { %p2144_p5 = pnand %p2143_p4, %p2383_p9 }
 0x447   : > { %p2149_p10 = por %p2148_p8, %p2147_p7 }
 0x448   : > { %p2145_p6 = pneg %p2144_p5 }
 0x44a   : > { %p2150_p11 = pnand %p2149_p10, %p2145_p6 }
 0x44c   : > { %2153 = shalt.err (!%p2150_p11)
}
 0x44d   : > { %s2889_s24 = scalar_lea.sflag [#allocation11], %s2704_s25 }
 0x44e   : > { %1947 = dma.vmem_to_hbm [thread:$0]  (%p2383_p9), %s1503_s15, 16, %s2748_s29, %s2889_s24  }
 0x44f PF: > { %p1961_p13 = scmp.ge.s32.totalorder %s2240_s18, 2  ;;  %s1514_s8 = sand.u32 1, %s2204_s30  }
 0x450   : > { %s1515_s2 = scalar_lea.sflag [#allocation9], %s1514_s8 }
 0x451   : > { %p1952_p0 = pnand %p1961_p13, %p2395_p12 }
 0x453   : > { %p1953_p1 = pneg %p1952_p0 }
 0x455   : > { %2195 = dma.done.wait (%p1953_p1), %s1515_s2, 16  }
 0x456   : > { %2197 = vsyncadd (%p1953_p1), %s1515_s2, 4294967280  ;;  %s2890_s19 = sadd.s32 4294967294, %s2240_s18  }
 0x457   : > { %s1522_s9 = sand.u32 1, %s2890_s19  }
 0x458   : > { %s1523_s16 = scalar_lea.sflag [#allocation11], %s1522_s9 }
 0x459   : > { %2199 = dma.done.wait (%p1953_p1), %s1523_s16, 32  }
 0x45a   : > { %2201 = vsyncadd (%p1953_p1), %s1523_s16, 4294967264  ;;  %s26_s18 = sadd.s32 1, %s2240_s18   ;;  %s2891_s25 = sld [smem:[#allocation19_spill]] }
 0x45b   : > { %p23_p9 = scmp.ge.s32.totalorder %s26_s18, 6   ;;  %s2892_s14 = sld [smem:[#allocation15_spill]] }
 0x45c   : > { %s2893_s15 = sld [smem:[#allocation16_spill]]  ;;  %s2896_s30 = smov %s2208_s10 }
 0x45d   : > { %s2894_s16 = sld [smem:[#allocation17_spill]]  ;;  %s2897_s10 = smov %s2212_s11 }
 0x45e   : > { %s2895_s17 = sld [smem:[#allocation18_spill]]  ;;  %s2898_s11 = smov %s2390_s7 }
 0x45f   : > { %s2899_s12 = smov %s2220_s13  ;;  %25 = sbr.rel (!%p23_p9) target bundleno = 17 (0x11), region = 267 }
 0x460   : > { %s2900_s13 = smov %s2891_s25 }
 0x464   :  { %1535 = vsyncpa [#allocation9], 1 }
 0x465   :  { %1537 = vsyncpa [#allocation9 + $0x1], 1 }
 0x466   :  { %1538 = vsyncpa [#allocation11], 1 }
 0x467   :  { %1540 = vsyncpa [#allocation11 + $0x1], 1 }

</bundles_post_ra>
